<compile_context>
chip_gen: v6e
topology: v6e:2x2x1
jax: 0.10.0
libtpu: 0.0.40
codegen_flags: <defaults>
</compile_context>

<pallas_src>
import functools

import jax
import jax.numpy as jnp
from jax.experimental import pallas as pl
from jax.experimental.pallas import tpu as pltpu


def _reorg_kernel(x_ref, p_ref, o_ref, *, ss, hsws):
    # x_ref: (1, Cb, H*W)     one channel block, spatial flattened (lane-dense)
    # p_ref: (H*W, H*W)       0/1 permutation, VMEM-resident across the grid
    # o_ref: (1, s*s, Cb, Hs*Ws)
    x = x_ref[0]                      # (Cb, HW)
    p = p_ref[...]                    # (HW, HW)
    # Bit-exact for float dtypes: exactly one nonzero term per output element.
    y = jnp.dot(x, p, preferred_element_type=jnp.float32).astype(o_ref.dtype)
    for k in range(ss):               # s*s static, contiguous, lane-dense stores
        o_ref[0, k, :, :] = y[:, k * hsws:(k + 1) * hsws]


def _pick_channel_block(C, hw, itemsize, budget_bytes=2 << 20):
    # Largest channel block whose input tile fits the per-step budget while
    # respecting the (8, 128) block rule (second-to-last block dim must be a
    # multiple of 8, or the full array dim).
    if C * hw * itemsize <= budget_bytes:
        return C
    for d in range(C - 1, 0, -1):
        if C % d == 0 and d % 8 == 0 and d * hw * itemsize <= budget_bytes:
            return d
    return C


def _build_permutation(H, W, stride, dtype):
    s = stride
    Hs, Ws = H // s, W // s
    ss = s * s
    hw = H * W
    kk = jnp.arange(ss)
    dy = kk // s
    dx = kk % s
    pp = jnp.arange(Hs)
    qq = jnp.arange(Ws)
    # src[k, p, q] = flat input index feeding output position (k, p, q)
    src = ((pp[None, :, None] * s + dy[:, None, None]) * W
           + (qq[None, None, :] * s + dx[:, None, None]))
    src_flat = src.reshape(-1)                                    # (hw,)
    # P[i, j] = 1  iff  i == src_flat[j]
    return (jnp.arange(hw)[:, None] == src_flat[None, :]).astype(dtype)


def reorg(x, stride=2):
    B, C, H, W = x.shape
    s = stride
    assert H % s == 0 and W % s == 0
    assert jnp.issubdtype(x.dtype, jnp.floating), (
        "permutation-matmul path requires a float dtype")
    # TODO(synk): integer dtypes need a non-MXU (strided-load / bitcast) path.

    Hs, Ws = H // s, W // s
    ss = s * s
    hw = H * W
    hsws = Hs * Ws
    itemsize = jnp.dtype(x.dtype).itemsize

    # TODO(synk): for very large H*W, fall back to the factored P_H @ x @ P_W
    # formulation; the single (HW, HW) permutation only makes sense for modest
    # spatial dims (the real YOLOv2 reorg input is 26x26 -> ~1.8 MiB of P).
    assert hw * hw * itemsize <= (16 << 20), "spatial plane too large for single-P path"

    cb = _pick_channel_block(C, hw, itemsize)
    grid = (B, C // cb)

    perm = _build_permutation(H, W, s, x.dtype)

    # VMEM budget: double-buffered in/out blocks + resident P + f32 intermediate.
    in_block = cb * hw * itemsize
    out_block = ss * cb * hsws * itemsize
    p_bytes = hw * hw * itemsize
    vmem_est = 2 * in_block + 2 * out_block + 2 * p_bytes + cb * hw * 4
    vmem_limit = int(min(max(2 * vmem_est, 16 << 20), 48 << 20))

    kernel = functools.partial(_reorg_kernel, ss=ss, hsws=hsws)
    out4 = pl.pallas_call(
        kernel,
        out_shape=jax.ShapeDtypeStruct((B, ss, C, hsws), x.dtype),
        grid_spec=pltpu.PrefetchScalarGridSpec(
            num_scalar_prefetch=0,
            grid=grid,
            in_specs=[
                pl.BlockSpec((1, cb, hw), lambda b, cblk: (b, cblk, 0)),
                pl.BlockSpec((hw, hw), lambda b, cblk: (0, 0)),
            ],
            out_specs=pl.BlockSpec((1, ss, cb, hsws),
                                   lambda b, cblk: (b, 0, cblk, 0)),
        ),
        compiler_params=pltpu.CompilerParams(
            dimension_semantics=("parallel", "parallel"),
            vmem_limit_bytes=vmem_limit),
        cost_estimate=pl.CostEstimate(
            flops=0, transcendentals=0,
            bytes_accessed=int(2 * B * C * hw * itemsize + p_bytes)),
    )(x.reshape(B, C, hw), perm)

    # Row-major-compatible (free) reshape back to the PyTorch output layout:
    # (B, s*s, C, Hs*Ws) -> (B, s*s*C, Hs, Ws).
    return out4.reshape(B, ss * C, Hs, Ws)


def _reorg_reference(x, stride=2):
    # Pure-JAX replica of the PyTorch ReorgLayer.forward semantics.
    B, C, H, W = x.shape
    s = stride
    y = x.reshape(B, C, H // s, s, W // s, s)
    y = jnp.transpose(y, (0, 3, 5, 1, 2, 4))          # (B, dy, dx, C, H//s, W//s)
    return y.reshape(B, s * s * C, H // s, W // s)


if __name__ == "__main__":
    key = jax.random.PRNGKey(0)
    # ReorgLayer has no learnable parameters (stride=2).
    x = jax.random.normal(key, (2, 4, 16, 16), dtype=jnp.float32)

    out = jax.block_until_ready(reorg(x, stride=2))
    ref = _reorg_reference(x, stride=2)

    assert out.shape == (2, 16, 8, 8), out.shape
    assert out.dtype == x.dtype
    assert jnp.array_equal(out, ref), "mismatch vs reference"

    print("KERNEL_OK")
</pallas_src>

<mosaic_0001>
module attributes {stable_mosaic.version = 11 : i64} {
  func.func @_reorg_kernel(%arg0: i32, %arg1: i32, %arg2: memref<1x4x256xf32, #tpu.memory_space<vmem>>, %arg3: memref<256x256xf32, #tpu.memory_space<vmem>>, %arg4: memref<1x4x4x64xf32, #tpu.memory_space<vmem>>) attributes {dimension_semantics = [#tpu.dimension_semantics<parallel>, #tpu.dimension_semantics<parallel>], iteration_bounds = array<i64: 2, 1>, scalar_prefetch = 0 : i64, scratch_operands = 0 : i64, tpu.core_type = #tpu.core_type<tc>, window_params = [{transform_indices = @transform_0, window_bounds = array<i64: 1, 4, 256>}, {pipeline_mode = #tpu.pipeline_mode<synchronous>, transform_indices = @transform_1, window_bounds = array<i64: 256, 256>}, {transform_indices = @transform_2, window_bounds = array<i64: 1, 4, 4, 64>}]} {
    %c0 = arith.constant 0 : index
    %c0_0 = arith.constant 0 : index
    %c0_1 = arith.constant 0 : index
    %0 = vector.load %arg2[%c0, %c0_0, %c0_1] : memref<1x4x256xf32, #tpu.memory_space<vmem>>, vector<1x4x256xf32>
    %1 = vector.shape_cast %0 : vector<1x4x256xf32> to vector<4x256xf32>
    %c0_2 = arith.constant 0 : index
    %c0_3 = arith.constant 0 : index
    %2 = vector.load %arg3[%c0_2, %c0_3] : memref<256x256xf32, #tpu.memory_space<vmem>>, vector<256x256xf32>
    %cst = arith.constant dense<0.000000e+00> : vector<4x256xf32>
    %3 = tpu.matmul %1, %2, %cst {dimension_numbers = #tpu.dot_dimension_numbers<[1], [0], [0], [1], [0, 0, 1, 1], [], []>} : vector<4x256xf32>, vector<256x256xf32>, vector<4x256xf32> -> vector<4x256xf32>
    %4 = vector.extract_strided_slice %3 {offsets = [0, 0], sizes = [4, 64], strides = [1, 1]} : vector<4x256xf32> to vector<4x64xf32>
    %c0_4 = arith.constant 0 : index
    %c0_5 = arith.constant 0 : index
    %c0_6 = arith.constant 0 : index
    %c0_7 = arith.constant 0 : index
    %5 = vector.load %arg4[%c0_4, %c0_5, %c0_6, %c0_7] : memref<1x4x4x64xf32, #tpu.memory_space<vmem>>, vector<1x1x4x64xf32>
    %6 = vector.shape_cast %5 : vector<1x1x4x64xf32> to vector<4x64xf32>
    %7 = vector.shape_cast %4 : vector<4x64xf32> to vector<1x1x4x64xf32>
    tpu.vector_store %arg4[%c0_4, %c0_5, %c0_6, %c0_7], %7 {strides = array<i32>} : memref<1x4x4x64xf32, #tpu.memory_space<vmem>>, vector<1x1x4x64xf32>,
    %8 = vector.extract_strided_slice %3 {offsets = [0, 64], sizes = [4, 64], strides = [1, 1]} : vector<4x256xf32> to vector<4x64xf32>
    %c0_8 = arith.constant 0 : index
    %c1 = arith.constant 1 : index
    %c0_9 = arith.constant 0 : index
    %c0_10 = arith.constant 0 : index
    %9 = vector.load %arg4[%c0_8, %c1, %c0_9, %c0_10] : memref<1x4x4x64xf32, #tpu.memory_space<vmem>>, vector<1x1x4x64xf32>
    %10 = vector.shape_cast %9 : vector<1x1x4x64xf32> to vector<4x64xf32>
    %11 = vector.shape_cast %8 : vector<4x64xf32> to vector<1x1x4x64xf32>
    tpu.vector_store %arg4[%c0_8, %c1, %c0_9, %c0_10], %11 {strides = array<i32>} : memref<1x4x4x64xf32, #tpu.memory_space<vmem>>, vector<1x1x4x64xf32>,
    %12 = vector.extract_strided_slice %3 {offsets = [0, 128], sizes = [4, 64], strides = [1, 1]} : vector<4x256xf32> to vector<4x64xf32>
    %c0_11 = arith.constant 0 : index
    %c2 = arith.constant 2 : index
    %c0_12 = arith.constant 0 : index
    %c0_13 = arith.constant 0 : index
    %13 = vector.load %arg4[%c0_11, %c2, %c0_12, %c0_13] : memref<1x4x4x64xf32, #tpu.memory_space<vmem>>, vector<1x1x4x64xf32>
    %14 = vector.shape_cast %13 : vector<1x1x4x64xf32> to vector<4x64xf32>
    %15 = vector.shape_cast %12 : vector<4x64xf32> to vector<1x1x4x64xf32>
    tpu.vector_store %arg4[%c0_11, %c2, %c0_12, %c0_13], %15 {strides = array<i32>} : memref<1x4x4x64xf32, #tpu.memory_space<vmem>>, vector<1x1x4x64xf32>,
    %16 = vector.extract_strided_slice %3 {offsets = [0, 192], sizes = [4, 64], strides = [1, 1]} : vector<4x256xf32> to vector<4x64xf32>
    %c0_14 = arith.constant 0 : index
    %c3 = arith.constant 3 : index
    %c0_15 = arith.constant 0 : index
    %c0_16 = arith.constant 0 : index
    %17 = vector.load %arg4[%c0_14, %c3, %c0_15, %c0_16] : memref<1x4x4x64xf32, #tpu.memory_space<vmem>>, vector<1x1x4x64xf32>
    %18 = vector.shape_cast %17 : vector<1x1x4x64xf32> to vector<4x64xf32>
    %19 = vector.shape_cast %16 : vector<4x64xf32> to vector<1x1x4x64xf32>
    tpu.vector_store %arg4[%c0_14, %c3, %c0_15, %c0_16], %19 {strides = array<i32>} : memref<1x4x4x64xf32, #tpu.memory_space<vmem>>, vector<1x1x4x64xf32>,
    return
  }
  func.func @transform_0(%arg0: i32, %arg1: i32) -> (i32, i32, i32) {
    %c0_i32 = arith.constant 0 : i32
    %c0_i32_0 = arith.constant 0 : i32
    return %arg0, %arg1, %c0_i32 : i32, i32, i32
  }
  func.func @transform_1(%arg0: i32, %arg1: i32) -> (i32, i32) {
    %c0_i32 = arith.constant 0 : i32
    %c0_i32_0 = arith.constant 0 : i32
    %c0_i32_1 = arith.constant 0 : i32
    return %c0_i32, %c0_i32_0 : i32, i32
  }
  func.func @transform_2(%arg0: i32, %arg1: i32) -> (i32, i32, i32, i32) {
    %c0_i32 = arith.constant 0 : i32
    %c0_i32_0 = arith.constant 0 : i32
    %c0_i32_1 = arith.constant 0 : i32
    return %arg0, %c0_i32, %arg1, %c0_i32_0 : i32, i32, i32, i32
  }
}

</mosaic_0001>

<bundles_post_ra>
// kernel: tpu_custom_call.1
= control target key start
LH: loop header
LB: loop body
LE: loop exit
PB: predicated region body
PF: predicated region fallthrough
CT: control target
= control target key end

     0   :  { %7 = vsyncpa [#allocation3], 0  ;;  %s919_s0 = inlined_call_operand.hbm [shape: f32[2,4,256], index: 0, kind: input, shape index: {}]   ;;  %s920_s1 = inlined_call_operand.hbm [shape: f32[256,256], index: 1, kind: input, shape index: {}]   ;;  %s921_s2 = inlined_call_operand.hbm [shape: f32[2,4,4,64], index: 2, kind: output, shape index: {}]  }
   0x1   :  { %9 = vsyncpa [#allocation3 + $0x1], 0 }
   0x2   :  { %10 = vsyncpa [#allocation6], 0 }
   0x3   :  { %11 = vsyncpa [#allocation4], 0 }
   0x4   :  { %13 = vsyncpa [#allocation4 + $0x1], 0  ;;  %s721_s9 = smov 0   ;;  %s723_s10 = smov 0  }
   0x5   :  { %s725_s11 = smov 0   ;;  %s727_s12 = smov 0  }
   0x6   :  { %s729_s13 = smov 0   ;;  %s731_s14 = smov 0  }
   0x7 LB: > { %s459_s15 = sadd.s32 4294967295, %s697_s14   ;;  %s460_s16 = sadd.s32 4294967294, %s697_s14   ;;  %s697_s14 = sphi %s731_s14, %s19_s14   ;;  %s693_s13 = sphi %s729_s13, %s939_s13   ;;  %s689_s12 = sphi %s727_s12, %s938_s12   ;;  %s685_s11 = sphi %s725_s11, %s937_s11   ;;  %s681_s10 = sphi %s723_s10, %s936_s10   ;;  %s677_s9 = sphi %s721_s9, %s935_s9  }
   0x8   : > { %p53_p0 = scmp.ne.s32.totalorder %s681_s10, %s677_s9  ;;  %p755_p1 = scmp.eq.s32.totalorder %s459_s15, 0 }
   0x9   : > { %p759_p2 = scmp.eq.s32.totalorder %s459_s15, 1  ;;  %p106_p3 = scmp.eq.s32.totalorder %s460_s16, 1 }
   0xa   : > { %p765_p4 = por %p755_p1, %p53_p0  ;;  %p461_p5 = scmp.ge.s32.totalorder %s697_s14, 1 }
   0xb   : > { %p770_p6 = por %p106_p3, %p53_p0  ;;  %p113_p7 = scmp.lt.s32.totalorder %s697_s14, 3 }
   0xc   : > { %s925_s19 = scalar_select %p765_p4, 1, 0 }
   0xd   : > { %s926_s20 = scalar_select %p770_p6, 1, 0 }
   0xe   : > { %p775_p8 = pnand %p461_p5, %p113_p7  ;;  %s699_s22 = smov [#allocation5]  }
   0xf   : > { %s125_s23 = sshll.u32 %s699_s22, 4  ;;  %s31_s25 = sadd.s32 1, %s693_s13  ;;  %s126_s23 = int_to_ptr.vmem [resolvable:$true] %s125_s23 }
  0x10   : > { %p489_p9 = pneg %p775_p8  ;;  %s570_s26 = scalar_lea.vmem %s126_s23, 8192 }
  0x11   : > { %p571_p13 = scmp.ne.s32.totalorder %s126_s23, %s570_s26  ;;  %p578_p5 = scmp.lt.s32.totalorder %s126_s23, %s126_s23 }
  0x12   : > { %p784_p11 = pnand %p489_p9, %p755_p1  ;;  %p579_p7 = scmp.lt.s32.totalorder %s570_s26, %s570_s26 }
  0x14   : > { %p561_p12 = pneg %p784_p11  ;;  %p580_p6 = por %p579_p7, %p578_p5 }
  0x16   : > { %p573_p0 = pnand %p571_p13, %p561_p12 }
  0x18   : > { %p574_p3 = pneg %p573_p0 }
  0x1a   : > { %p581_p4 = pnand %p580_p6, %p574_p3 }
  0x1c   : > { %584 = shalt.err (!%p581_p4)
}
  0x1d   : > { %s700_s27 = smov 256   ;;  %s701_s28 = smov 16  }
  0x1e   : > { %492 = dma.hbm_to_vmem [thread:$0]  (!%p784_p11), %s920_s1, 8192, %s126_s23, [#allocation6], %s700_s27, %s700_s27, %s701_s28  }
  0x1f   : > { %p33_p6 = scmp.ge.s32.totalorder %s31_s25, 2  ;;  %s40_s3 = sadd.s32 1, %s685_s11 }
  0x20   : > { %p47_p4 = scmp.ne.s32.totalorder %s685_s11, %s681_s10  ;;  %p48_p9 = scmp.eq.s32.totalorder %s697_s14, 0 }
  0x21   : > { %s941_s25 = smov (%p33_p6, %s31_s25), 0  ;;  %p502_p0 = scmp.lt.s32.totalorder %s697_s14, 2 }
  0x22   : > { %p802_p12 = por %p48_p9, %p47_p4  ;;  %p808_p13 = por %p759_p2, %p47_p4 }
  0x23   : > { %s35_s6 = ssub.s32 %s693_s13, %s941_s25  ;;  %s139_s7 = sand.u32 1, %s685_s11  }
  0x24   : > { %p38_p11 = scmp.eq.s32.totalorder %s35_s6, 0  ;;  %s464_s8 = sshll.u32 %s139_s7, 3 }
  0x25   : > { %s479_s16 = sshll.u32 %s693_s13, 7  ;;  %s143_s26 = scalar_lea.vmem [#allocation2], %s464_s8 }
  0x26   : > { %s817_s15 = scalar_select %p38_p11, %s685_s11, %s40_s3  }
  0x27   : > { %s151_s24 = scalar_lea.hbm %s919_s0, %s479_s16  ;;  %s153_s27 = sshll.u32 %s143_s26, 4  ;;  %s154_s27 = int_to_ptr.vmem [resolvable:$true] %s153_s27 }
  0x28   : > { %p825_p2 = pnand %p502_p0, %p802_p12  ;;  %s140_s28 = scalar_lea.sflag [#allocation3], %s139_s7 }
  0x29   : > { %s598_s29 = scalar_lea.vmem %s154_s27, 128  ;;  %s702_s30 = smov [#allocation2]  }
  0x2a   : > { %p587_p3 = pneg %p825_p2  ;;  %p599_p5 = scmp.ne.s32.totalorder %s154_s27, %s598_s29 }
  0x2b   : > { %s603_s3 = sshll.u32 %s702_s30, 4  ;;  %s604_s3 = int_to_ptr.vmem [resolvable:$false] %s603_s3 }
  0x2c   : > { %p601_p7 = pnand %p599_p5, %p587_p3  ;;  %s605_s6 = scalar_lea.vmem %s604_s3, 256 }
  0x2d   : > { %p606_p4 = scmp.lt.s32.totalorder %s154_s27, %s604_s3  ;;  %p607_p9 = scmp.lt.s32.totalorder %s605_s6, %s598_s29 }
  0x2e   : > { %p602_p6 = pneg %p601_p7 }
  0x2f   : > { %p608_p11 = por %p607_p9, %p606_p4 }
  0x31   : > { %p609_p10 = pnand %p608_p11, %p602_p6 }
  0x33   : > { %612 = shalt.err (!%p609_p10)
}
  0x34   : > { %496 = dma.hbm_to_vmem [thread:$0]  (!%p825_p2), %s151_s24, 128, %s154_s27, %s140_s28  }
  0x35   : > { %162 = sbr.rel (%p775_p8) target bundleno = 452 (0x1c4), region = 28  ;;  %s836_s4 = sand.u32 (!%p775_p8), 1, %s681_s10  }
  0x36   : > { %s468_s7 = sshll.u32 (!%p775_p8), %s836_s4, 3  ;;  %s165_s8 = scalar_lea.sflag (!%p775_p8), [#allocation3], %s836_s4 }
  0x37   : > { %s840_s16 = scalar_lea.vmem (!%p775_p8), [#allocation2], %s468_s7  ;;  %p932_p12 = scmp.ne.s32.totalorder (!%p775_p8), %s925_s19, 0 }
  0x3a   : > { %664 = dma.done.wait (%p932_p12), %s165_s8, 128  }
  0x3b   : > { %666 = vsyncadd (%p932_p12), %s165_s8, 4294967168 }
  0x3c   : > { %668 = dma.done.wait (%p755_p1), [#allocation6], 8192  }
  0x3d   : > { %670 = vsyncadd (%p755_p1), [#allocation6], 4294959104  ;;  %v225_v0 = vld [vmem:[#allocation5 + $0xf8] sm:$0xff]  ;;  %v224_v1 = vld [vmem:[#allocation5 + $0xf0] sm:$0xff]  ;;  %s470_s17 = sshll.u32 %s836_s4, 4  ;;  %vm332_vm0 = vcmask 519168  }
  0x3e   : > { %v223_v2 = vld [vmem:[#allocation5 + $0xe8] sm:$0xff]  ;;  %261 = vmatprep.subr.mxu0 %v225_v0  ;;  %v222_v3 = vld [vmem:[#allocation5 + $0xe0] sm:$0xff]  ;;  %v221_v4 = vld [vmem:[#allocation5 + $0xd8] sm:$0xff]  ;;  %s192_s19 = scalar_lea.vmem [#allocation7], %s470_s17  ;;  %s703_s21 = smov 64  }
  0x3f   : > { %262 = vmatpush1.msra.mxu0 %v224_v1  ;;  %v220_v5 = vld [vmem:[#allocation5 + $0xd0] sm:$0xff]  ;;  %v219_v6 = vld [vmem:[#allocation5 + $0xc8] sm:$0xff]  ;;  %v218_v7 = vld [vmem:[#allocation5 + $0xc0] sm:$0xff]  ;;  %s363_s22 = sshll.u32 %s192_s19, 4  ;;  %s480_s23 = sshll.u32 %s689_s12, 8  ;;  %s863_s22 = int_to_ptr.vmem [resolvable:$true] %s363_s22 }
  0x40   : > { %263 = vmatprep.subr.mxu0 %v223_v2  ;;  %v217_v8 = vld [vmem:[#allocation5 + $0xb8] sm:$0xff]  ;;  %v216_v9 = vld [vmem:[#allocation5 + $0xb0] sm:$0xff]  ;;  %v215_v10 = vld [vmem:[#allocation5 + $0xa8] sm:$0xff]  ;;  %s868_s27 = scalar_lea.hbm %s921_s2, %s480_s23  ;;  %s349_s18 = scalar_lea.sflag [#allocation4], %s836_s4 }
  0x41   : > { %264 = vmatpush1.msra.mxu0 %v222_v3  ;;  %v214_v11 = vld [vmem:[#allocation5 + $0xa0] sm:$0xff]  ;;  %v213_v12 = vld [vmem:[#allocation5 + $0x98] sm:$0xff]  ;;  %v212_v13 = vld [vmem:[#allocation5 + $0x90] sm:$0xff]  ;;  %s613_s28 = scalar_lea.vmem %s863_s22, 256  ;;  %s704_s12 = smov [#allocation7]  }
  0x42   : > { %265 = vmatprep.subr.mxu0 %v221_v4  ;;  %v211_v14 = vld [vmem:[#allocation5 + $0x88] sm:$0xff]  ;;  %v210_v15 = vld [vmem:[#allocation5 + $0x80] sm:$0xff]  ;;  %v209_v16 = vld [vmem:[#allocation5 + $0x78] sm:$0xff]  ;;  %p614_p1 = scmp.ne.s32.totalorder %s863_s22, %s613_s28  ;;  %s617_s29 = sshll.u32 %s704_s12, 4  ;;  %s618_s29 = int_to_ptr.vmem [resolvable:$false] %s617_s29 }
  0x43   : > { %266 = vmatpush1.msra.mxu0 %v220_v5  ;;  %v208_v17 = vld [vmem:[#allocation5 + $0x70] sm:$0xff]  ;;  %v207_v18 = vld [vmem:[#allocation5 + $0x68] sm:$0xff]  ;;  %v206_v19 = vld [vmem:[#allocation5 + $0x60] sm:$0xff]  ;;  %s619_s30 = scalar_lea.vmem %s618_s29, 512  ;;  %p620_p0 = scmp.lt.s32.totalorder %s863_s22, %s618_s29 }
  0x44   : > { %267 = vmatprep.subr.mxu0 %v219_v6  ;;  %v205_v20 = vld [vmem:[#allocation5 + $0x58] sm:$0xff]  ;;  %v204_v21 = vld [vmem:[#allocation5 + $0x50] sm:$0xff]  ;;  %v203_v22 = vld [vmem:[#allocation5 + $0x48] sm:$0xff]  ;;  %p615_p8 = pnand %p614_p1, %p808_p13  ;;  %p621_p2 = scmp.lt.s32.totalorder %s619_s30, %s613_s28 }
  0x45   : > { %268 = vmatpush1.msra.mxu0 %v218_v7  ;;  %v202_v23 = vld [vmem:[#allocation5 + $0x40] sm:$0xff]  ;;  %v851_v24 = vld [vmem:[%s840_s16] sm:$0xff]  ;;  %v199_v28 = vld [vmem:[#allocation5 + $0x28] sm:$0xff] }
  0x46   : > { %269 = vmatprep.subr.mxu0 %v217_v8  ;;  %v201_v25 = vld [vmem:[#allocation5 + $0x38] sm:$0xff]  ;;  %v259_v26 = vcombine.high %v851_v24, %v851_v24  ;;  %v200_v27 = vld [vmem:[#allocation5 + $0x30] sm:$0xff]  ;;  %v198_v29 = vld [vmem:[#allocation5 + $0x20] sm:$0xff]  ;;  %p616_p10 = pneg %p615_p8  ;;  %p622_p3 = por %p621_p2, %p620_p0 }
  0x47   : > { %270 = vmatpush1.msra.mxu0 %v216_v9  ;;  %v197_v30 = vld [vmem:[#allocation5 + $0x18] sm:$0xff]  ;;  %v196_v31 = vld [vmem:[#allocation5 + $0x10] sm:$0xff]  ;;  %v195_v32 = vld [vmem:[#allocation5 + $0x8] sm:$0xff] }
  0x48   : > { %271 = vmatprep.subr.mxu0 %v215_v10  ;;  %325 = vmatprep.mubr.f32.mxu0 %v259_v26  ;;  %v194_v33 = vld [vmem:[#allocation5] sm:$0xff]  ;;  %v257_v34 = vld [vmem:[#allocation5 + $0x1f8] sm:$0xff]  ;;  %v256_v35 = vld [vmem:[#allocation5 + $0x1f0] sm:$0xff]  ;;  %p623_p5 = pnand %p622_p3, %p616_p10 }
  0x49   : > { %272 = vmatpush1.msra.mxu0 %v214_v11  ;;  %v255_v36 = vld [vmem:[#allocation5 + $0x1e8] sm:$0xff]  ;;  %v254_v37 = vld [vmem:[#allocation5 + $0x1e0] sm:$0xff]  ;;  %v253_v38 = vld [vmem:[#allocation5 + $0x1d8] sm:$0xff] }
  0x4a   : > { %273 = vmatprep.subr.mxu0 %v213_v12  ;;  %v252_v39 = vld [vmem:[#allocation5 + $0x1d0] sm:$0xff]  ;;  %v251_v40 = vld [vmem:[#allocation5 + $0x1c8] sm:$0xff]  ;;  %v250_v41 = vld [vmem:[#allocation5 + $0x1c0] sm:$0xff] }
  0x4b   : > { %274 = vmatpush1.msra.mxu0 %v212_v13  ;;  %v249_v42 = vld [vmem:[#allocation5 + $0x1b8] sm:$0xff]  ;;  %v248_v43 = vld [vmem:[#allocation5 + $0x1b0] sm:$0xff]  ;;  %v247_v44 = vld [vmem:[#allocation5 + $0x1a8] sm:$0xff] }
  0x4c   : > { %275 = vmatprep.subr.mxu0 %v211_v14  ;;  %v246_v45 = vld [vmem:[#allocation5 + $0x1a0] sm:$0xff]  ;;  %v245_v46 = vld [vmem:[#allocation5 + $0x198] sm:$0xff]  ;;  %v244_v47 = vld [vmem:[#allocation5 + $0x190] sm:$0xff] }
  0x4d   : > { %276 = vmatpush1.msra.mxu0 %v210_v15  ;;  %v243_v48 = vld [vmem:[#allocation5 + $0x188] sm:$0xff]  ;;  %v242_v49 = vld [vmem:[#allocation5 + $0x180] sm:$0xff]  ;;  %v241_v50 = vld [vmem:[#allocation5 + $0x178] sm:$0xff] }
  0x4e   : > { %277 = vmatprep.subr.mxu0 %v209_v16  ;;  %v240_v51 = vld [vmem:[#allocation5 + $0x170] sm:$0xff]  ;;  %v239_v52 = vld [vmem:[#allocation5 + $0x168] sm:$0xff]  ;;  %v238_v53 = vld [vmem:[#allocation5 + $0x160] sm:$0xff] }
  0x4f   : > { %278 = vmatpush1.msra.mxu0 %v208_v17  ;;  %v237_v54 = vld [vmem:[#allocation5 + $0x158] sm:$0xff]  ;;  %v236_v55 = vld [vmem:[#allocation5 + $0x150] sm:$0xff]  ;;  %v235_v56 = vld [vmem:[#allocation5 + $0x148] sm:$0xff] }
  0x50   : > { %279 = vmatprep.subr.mxu0 %v207_v18  ;;  %v234_v57 = vld [vmem:[#allocation5 + $0x140] sm:$0xff]  ;;  %v233_v58 = vld [vmem:[#allocation5 + $0x138] sm:$0xff]  ;;  %v232_v59 = vld [vmem:[#allocation5 + $0x130] sm:$0xff] }
  0x51   : > { %280 = vmatpush1.msra.mxu0 %v206_v19  ;;  %v231_v60 = vld [vmem:[#allocation5 + $0x128] sm:$0xff]  ;;  %v230_v61 = vld [vmem:[#allocation5 + $0x120] sm:$0xff]  ;;  %v229_v62 = vld [vmem:[#allocation5 + $0x118] sm:$0xff] }
  0x52   : > { %281 = vmatprep.subr.mxu0 %v205_v20  ;;  %v228_v63 = vld [vmem:[#allocation5 + $0x110] sm:$0xff]  ;;  %v227_v0 = vld [vmem:[#allocation5 + $0x108] sm:$0xff]  ;;  %v226_v1 = vld [vmem:[#allocation5 + $0x100] sm:$0xff] }
  0x53   : > { %282 = vmatpush1.msra.mxu0 %v204_v21 }
  0x54   : > { %283 = vmatprep.subr.mxu0 %v203_v22 }
  0x55   : > { %284 = vmatpush1.msra.mxu0 %v202_v23 }
  0x56   : > { %285 = vmatprep.subr.mxu0 %v201_v25 }
  0x57   : > { %286 = vmatpush1.msra.mxu0 %v200_v27 }
  0x58   : > { %287 = vmatprep.subr.mxu0 %v199_v28 }
  0x59   : > { %288 = vmatpush1.msra.mxu0 %v198_v29 }
  0x5a   : > { %289 = vmatprep.subr.mxu0 %v197_v30 }
  0x5b   : > { %290 = vmatpush1.msra.mxu0 %v196_v31 }
  0x5c   : > { %291 = vmatprep.subr.mxu0 %v195_v32 }
  0x5d   : > { %292 = vmatpush1.msra.mxu0 %v194_v33 }
  0x5e   : > { %293 = vmatprep.subr.mxu0 %v257_v34 }
  0x5f   : > { %294 = vmatpush2.msra.mxu0 %v256_v35 }
  0x60   : > { %295 = vmatprep.subr.mxu0 %v255_v36 }
  0x61   : > { %296 = vmatpush2.msra.mxu0 %v254_v37 }
  0x62   : > { %297 = vmatprep.subr.mxu0 %v253_v38 }
  0x63   : > { %298 = vmatpush2.msra.mxu0 %v252_v39 }
  0x64   : > { %299 = vmatprep.subr.mxu0 %v251_v40 }
  0x65   : > { %300 = vmatpush2.msra.mxu0 %v250_v41 }
  0x66   : > { %301 = vmatprep.subr.mxu0 %v249_v42 }
  0x67   : > { %302 = vmatpush2.msra.mxu0 %v248_v43 }
  0x68   : > { %303 = vmatprep.subr.mxu0 %v247_v44 }
  0x69   : > { %304 = vmatpush2.msra.mxu0 %v246_v45 }
  0x6a   : > { %305 = vmatprep.subr.mxu0 %v245_v46 }
  0x6b   : > { %306 = vmatpush2.msra.mxu0 %v244_v47 }
  0x6c   : > { %307 = vmatprep.subr.mxu0 %v243_v48 }
  0x6d   : > { %308 = vmatpush2.msra.mxu0 %v242_v49 }
  0x6e   : > { %309 = vmatprep.subr.mxu0 %v241_v50 }
  0x6f   : > { %310 = vmatpush2.msra.mxu0 %v240_v51 }
  0x70   : > { %311 = vmatprep.subr.mxu0 %v239_v52 }
  0x71   : > { %312 = vmatpush2.msra.mxu0 %v238_v53 }
  0x72   : > { %313 = vmatprep.subr.mxu0 %v237_v54 }
  0x73   : > { %314 = vmatpush2.msra.mxu0 %v236_v55 }
  0x74   : > { %315 = vmatprep.subr.mxu0 %v235_v56 }
  0x75   : > { %316 = vmatpush2.msra.mxu0 %v234_v57 }
  0x76   : > { %317 = vmatprep.subr.mxu0 %v233_v58 }
  0x77   : > { %318 = vmatpush2.msra.mxu0 %v232_v59 }
  0x78   : > { %319 = vmatprep.subr.mxu0 %v231_v60 }
  0x79   : > { %320 = vmatpush2.msra.mxu0 %v230_v61 }
  0x7a   : > { %321 = vmatprep.subr.mxu0 %v229_v62 }
  0x7b   : > { %322 = vmatpush2.msra.mxu0 %v228_v63 }
  0x7c   : > { %323 = vmatprep.subr.mxu0 %v227_v0 }
  0x7d   : > { %324 = vmatpush2.msra.mxu0 %v226_v1 }
  0x7e   : > { %326 = vmatmul.mubr.f32.vlgmr.msra.gmra.mxu0 %v851_v24 }
 0x13e   : > { %v327_v2 = vpop.f32.mrf.mxu0 }
 0x13f   : > { %333 = vst.msk [vmem:[%s192_s19] sm:$0xf] %vm332_vm0, %v327_v2  ;;  %335 = vrot.lane.b32.xlu0 %v327_v2, %s703_s21 }
 0x140   : > { %v329_v3 = vpop.f32.mrf.mxu0 }
 0x141   : > { %472 = vst.msk [vmem:[%s192_s19 + $0x8] sm:$0xf] %vm332_vm0, %v329_v3 }
 0x143   : > { %343 = vrot.lane.b32.xlu0 %v329_v3, %s703_s21 }
 0x1b1   : > { %v336_v4 = vpop.permute.xlu0 %335 }
 0x1b2   : > { %471 = vst.msk [vmem:[%s192_s19 + $0x4] sm:$0xf] %vm332_vm0, %v336_v4 }
 0x1b5   : > { %v344_v5 = vpop.permute.xlu0 %343 }
 0x1b6   : > { %473 = vst.msk [vmem:[%s192_s19 + $0xc] sm:$0xf] %vm332_vm0, %v344_v5 }
 0x1b7   : > { %626 = shalt.err (!%p623_p5)
}
 0x1b8   : > { %s627_s3 = scalar_lea.hbm %s868_s27, 256  ;;  %s631_s8 = scalar_lea.hbm %s921_s2, 512 }
 0x1b9   : > { %p628_p7 = scmp.ne.s32.totalorder %s868_s27, %s627_s3  ;;  %p632_p9 = scmp.lt.s32.totalorder %s868_s27, %s921_s2 }
 0x1ba   : > { %p633_p11 = scmp.lt.s32.totalorder %s631_s8, %s627_s3 }
 0x1bb   : > { %p629_p6 = pnand %p628_p7, %p808_p13 }
 0x1bc   : > { %p634_p12 = por %p633_p11, %p632_p9 }
 0x1bd   : > { %p630_p4 = pneg %p629_p6 }
 0x1bf   : > { %p635_p1 = pnand %p634_p12, %p630_p4 }
 0x1c1   : > { %638 = shalt.err (!%p635_p1)
}
 0x1c2   : > { %s705_s19 = smov 4  }
 0x1c3   : > { %487 = dma.vmem_to_hbm [thread:$0]  (%p808_p13), %s863_s22, 256, %s868_s27, %s349_s18, %s703_s21, %s703_s21, %s705_s19  }
 0x1c4 PF: > { %s378_s23 = sand.u32 1, %s677_s9   ;;  %p933_p8 = scmp.ne.s32.totalorder %s926_s20, 0 }
 0x1c5   : > { %p934_p10 = scmp.ge.s32.totalorder %s697_s14, 2  ;;  %s379_s24 = scalar_lea.sflag [#allocation4], %s378_s23 }
 0x1c7   : > { %p498_p0 = pnand %p934_p10, %p933_p8 }
 0x1c9   : > { %p499_p2 = pneg %p498_p0 }
 0x1cb   : > { %672 = dma.done.wait (%p499_p2), %s379_s24, 256  }
 0x1cc   : > { %674 = vsyncadd (%p499_p2), %s379_s24, 4294967040  ;;  %s19_s14 = sadd.s32 1, %s697_s14   ;;  %s935_s9 = smov %s681_s10 }
 0x1cd   : > { %p16_p3 = scmp.ge.s32.totalorder %s19_s14, 4   ;;  %s936_s10 = smov %s685_s11 }
 0x1ce   : > { %s937_s11 = smov %s817_s15  ;;  %s938_s12 = smov %s693_s13 }
 0x1cf   : > { %s939_s13 = smov %s941_s25  ;;  %18 = sbr.rel (!%p16_p3) target bundleno = 7 (0x7), region = 80 }
 0x1d4   :  { %384 = vsyncpa [#allocation3], 1 }
 0x1d5   :  { %386 = vsyncpa [#allocation3 + $0x1], 1 }
 0x1d6   :  { %387 = vsyncpa [#allocation6], 1 }
 0x1d7   :  { %388 = vsyncpa [#allocation4], 1 }
 0x1d8   :  { %390 = vsyncpa [#allocation4 + $0x1], 1 }

</bundles_post_ra>
